<compile_context>
chip_gen: v7x
topology: tpu7x:2x2x1
jax: 0.10.0
libtpu: 0.0.40
codegen_flags: <defaults>
</compile_context>

<pallas_src>
import jax
import jax.numpy as jnp
from jax.experimental import pallas as pl
from jax.experimental.pallas import tpu as pltpu

D_IN = 28 * 28          # 784
H1 = 512
H2 = 256
D_OUT = 10
D_OUT_PAD = 128         # lane-dense logits path (zero-padded cols, sliced off)


def _round_up(x, m):
    return (x + m - 1) // m * m


def _use_bf16_epilogue():
    """bf16 bias-add/ReLU only on chips with a bf16 VPU (v6e / v7x)."""
    try:
        kind = jax.devices()[0].device_kind.lower()
    except Exception:
        return True
    return not any(t in kind for t in ("v2", "v3", "v4", "v5"))


def _choose_tm(B, target):
    if B <= 64:
        # Single exact tile; block dims equal to the full array dims are legal,
        # no padding and no boundary masking needed.
        return B
    # At least 2 grid steps so both v7x TensorCores get work, capped at
    # `target` rows to amortize the ~0.35us per-step overhead.
    return min(target, _round_up(pl.cdiv(B, 2), 8))


def mlp_kernel(x_ref, w1_ref, b1_ref, w2_ref, b2_ref, w3_ref, b3_ref, o_ref):
    # fc1: on-chip bf16 cast of the fp32 x tile, MXU matmul, fp32 accumulation.
    h = jnp.dot(x_ref[...].astype(w1_ref.dtype), w1_ref[...],
                preferred_element_type=jnp.float32)
    # Epilogue dtype follows the bias dtype: bf16 on v6e/v7x, fp32 on v5e-.
    h = jnp.maximum(h.astype(b1_ref.dtype) + b1_ref[...], 0.0)
    # fc2
    h = jnp.dot(h.astype(w2_ref.dtype), w2_ref[...],
                preferred_element_type=jnp.float32)
    h = jnp.maximum(h.astype(b2_ref.dtype) + b2_ref[...], 0.0)
    # fc3 (logits; padded to 128 lanes -> unmasked lane-dense stores)
    o = jnp.dot(h.astype(w3_ref.dtype), w3_ref[...],
                preferred_element_type=jnp.float32)
    o_ref[...] = (o + b3_ref[...]).astype(o_ref.dtype)


def mlp_forward(x_nchw, params, *, tm_target=512):
    """Forward pass. x_nchw: (B, 1, 28, 28) fp32. Returns (B, 10) fp32 logits."""
    w1, b1, w2, b2, w3, b3 = params
    B = x_nchw.shape[0]
    x = x_nchw.reshape(B, D_IN).astype(jnp.float32)     # nn.Flatten(); no pad/cast pass

    use_bf16_epi = _use_bf16_epilogue()
    act_dt = jnp.bfloat16 if use_bf16_epi else jnp.float32

    # Resident operands (tiny, one-time prep): bf16 MXU weights, zero-padded
    # logits path, biases in the epilogue dtype (b3 stays fp32 for fp32 out).
    w1b = w1.astype(jnp.bfloat16)                                         # (784, 512)
    w2b = w2.astype(jnp.bfloat16)                                         # (512, 256)
    w3b = jnp.pad(w3, ((0, 0), (0, D_OUT_PAD - D_OUT))).astype(jnp.bfloat16)  # (256, 128)
    b1c = b1.astype(act_dt)
    b2c = b2.astype(act_dt)
    b3f = jnp.pad(b3, ((0, 0), (0, D_OUT_PAD - D_OUT))).astype(jnp.float32)

    tm = _choose_tm(B, tm_target)
    grid = (pl.cdiv(B, tm),)

    # Weights/biases: constant index_map -> stay VMEM-resident across the grid.
    # (Single-buffering them via pipeline_mode is a negligible ~1 MiB saving
    #  here, so the default is kept for robustness.)
    resident = lambda shape: pl.BlockSpec(shape, lambda i: (0, 0))

    out = pl.pallas_call(
        mlp_kernel,
        out_shape=jax.ShapeDtypeStruct((B, D_OUT_PAD), jnp.float32),
        grid=grid,
        in_specs=[
            pl.BlockSpec((tm, D_IN), lambda i: (i, 0)),   # x tiles stream (fp32, K=784)
            resident((D_IN, H1)),
            resident((1, H1)),
            resident((H1, H2)),
            resident((1, H2)),
            resident((H2, D_OUT_PAD)),
            resident((1, D_OUT_PAD)),
        ],
        out_specs=pl.BlockSpec((tm, D_OUT_PAD), lambda i: (i, 0)),
        compiler_params=pltpu.CompilerParams(
            dimension_semantics=("parallel",),
            vmem_limit_bytes=32 * 1024 * 1024),
    )(x, w1b, b1c, w2b, b2c, w3b, b3f)

    return out[:, :D_OUT]


def init_params(key):
    """Deterministic init mimicking PyTorch Linear default (uniform +/- 1/sqrt(fan_in))."""
    dims = [(D_IN, H1), (H1, H2), (H2, D_OUT)]
    params = []
    keys = jax.random.split(key, 2 * len(dims))
    for i, (fan_in, fan_out) in enumerate(dims):
        bound = 1.0 / jnp.sqrt(fan_in)
        w = jax.random.uniform(keys[2 * i], (fan_in, fan_out),
                               minval=-bound, maxval=bound, dtype=jnp.float32)
        b = jax.random.uniform(keys[2 * i + 1], (1, fan_out),
                               minval=-bound, maxval=bound, dtype=jnp.float32)
        params += [w, b]
    return tuple(params)


def reference_forward(x_nchw, params):
    """Pure-JAX fp32 reference (matches the PyTorch module semantics)."""
    w1, b1, w2, b2, w3, b3 = params
    x = x_nchw.reshape(x_nchw.shape[0], -1)
    h = jnp.maximum(x @ w1 + b1, 0.0)
    h = jnp.maximum(h @ w2 + b2, 0.0)
    return h @ w3 + b3


if __name__ == "__main__":
    key = jax.random.PRNGKey(0)
    k_x, k_p = jax.random.split(key)
    x = jax.random.normal(k_x, (2, 1, 28, 28), dtype=jnp.float32)  # NCHW, batch=2
    params = init_params(k_p)

    out = mlp_forward(x, params)
    out = jax.block_until_ready(out)

    ref = reference_forward(x, params)
    assert out.shape == (2, 10), out.shape
    # bf16 MXU operands (and bf16 epilogue on v6e/v7x) with fp32 accumulation
    # -> loosened tolerance vs the fp32 reference.
    assert jnp.allclose(out, ref, atol=5e-2, rtol=5e-2), (
        "mismatch vs reference, max abs diff = "
        f"{float(jnp.max(jnp.abs(out - ref)))}")
    print("KERNEL_OK")
</pallas_src>

<mosaic_0001>
module attributes {stable_mosaic.version = 11 : i64} {
  func.func @mlp_kernel(%arg0: i32, %arg1: memref<2x784xf32, #tpu.memory_space<vmem>>, %arg2: memref<784x512xbf16, #tpu.memory_space<vmem>>, %arg3: memref<1x512xbf16, #tpu.memory_space<vmem>>, %arg4: memref<512x256xbf16, #tpu.memory_space<vmem>>, %arg5: memref<1x256xbf16, #tpu.memory_space<vmem>>, %arg6: memref<256x128xbf16, #tpu.memory_space<vmem>>, %arg7: memref<1x128xf32, #tpu.memory_space<vmem>>, %arg8: memref<2x128xf32, #tpu.memory_space<vmem>>) attributes {dimension_semantics = [#tpu.dimension_semantics<parallel>], iteration_bounds = array<i64: 1>, scalar_prefetch = 0 : i64, scratch_operands = 0 : i64, tpu.core_type = #tpu.core_type<tc>, window_params = [{transform_indices = @transform_0, window_bounds = array<i64: 2, 784>}, {pipeline_mode = #tpu.pipeline_mode<synchronous>, transform_indices = @transform_1, window_bounds = array<i64: 784, 512>}, {pipeline_mode = #tpu.pipeline_mode<synchronous>, transform_indices = @transform_2, window_bounds = array<i64: 1, 512>}, {pipeline_mode = #tpu.pipeline_mode<synchronous>, transform_indices = @transform_3, window_bounds = array<i64: 512, 256>}, {pipeline_mode = #tpu.pipeline_mode<synchronous>, transform_indices = @transform_4, window_bounds = array<i64: 1, 256>}, {pipeline_mode = #tpu.pipeline_mode<synchronous>, transform_indices = @transform_5, window_bounds = array<i64: 256, 128>}, {pipeline_mode = #tpu.pipeline_mode<synchronous>, transform_indices = @transform_6, window_bounds = array<i64: 1, 128>}, {transform_indices = @transform_7, window_bounds = array<i64: 2, 128>}]} {
    %c0 = arith.constant 0 : index
    %c0_0 = arith.constant 0 : index
    %0 = vector.load %arg1[%c0, %c0_0] : memref<2x784xf32, #tpu.memory_space<vmem>>, vector<2x784xf32>
    %1 = arith.truncf %0 : vector<2x784xf32> to vector<2x784xbf16>
    %c0_1 = arith.constant 0 : index
    %c0_2 = arith.constant 0 : index
    %2 = vector.load %arg2[%c0_1, %c0_2] : memref<784x512xbf16, #tpu.memory_space<vmem>>, vector<784x512xbf16>
    %cst = arith.constant dense<0.000000e+00> : vector<2x512xf32>
    %3 = tpu.matmul %1, %2, %cst {dimension_numbers = #tpu.dot_dimension_numbers<[1], [0], [0], [1], [0, 0, 1, 1], [], []>} : vector<2x784xbf16>, vector<784x512xbf16>, vector<2x512xf32> -> vector<2x512xf32>
    %4 = arith.truncf %3 : vector<2x512xf32> to vector<2x512xbf16>
    %c0_3 = arith.constant 0 : index
    %c0_4 = arith.constant 0 : index
    %5 = vector.load %arg3[%c0_3, %c0_4] : memref<1x512xbf16, #tpu.memory_space<vmem>>, vector<1x512xbf16>
    %6 = vector.broadcast %5 : vector<1x512xbf16> to vector<2x512xbf16>
    %7 = arith.addf %4, %6 : vector<2x512xbf16>
    %cst_5 = arith.constant 0.000000e+00 : bf16
    %8 = vector.broadcast %cst_5 : bf16 to vector<2x512xbf16>
    %9 = arith.maximumf %7, %8 : vector<2x512xbf16>
    %c0_6 = arith.constant 0 : index
    %c0_7 = arith.constant 0 : index
    %10 = vector.load %arg4[%c0_6, %c0_7] : memref<512x256xbf16, #tpu.memory_space<vmem>>, vector<512x256xbf16>
    %cst_8 = arith.constant dense<0.000000e+00> : vector<2x256xf32>
    %11 = tpu.matmul %9, %10, %cst_8 {dimension_numbers = #tpu.dot_dimension_numbers<[1], [0], [0], [1], [0, 0, 1, 1], [], []>} : vector<2x512xbf16>, vector<512x256xbf16>, vector<2x256xf32> -> vector<2x256xf32>
    %12 = arith.truncf %11 : vector<2x256xf32> to vector<2x256xbf16>
    %c0_9 = arith.constant 0 : index
    %c0_10 = arith.constant 0 : index
    %13 = vector.load %arg5[%c0_9, %c0_10] : memref<1x256xbf16, #tpu.memory_space<vmem>>, vector<1x256xbf16>
    %14 = vector.broadcast %13 : vector<1x256xbf16> to vector<2x256xbf16>
    %15 = arith.addf %12, %14 : vector<2x256xbf16>
    %cst_11 = arith.constant 0.000000e+00 : bf16
    %16 = vector.broadcast %cst_11 : bf16 to vector<2x256xbf16>
    %17 = arith.maximumf %15, %16 : vector<2x256xbf16>
    %c0_12 = arith.constant 0 : index
    %c0_13 = arith.constant 0 : index
    %18 = vector.load %arg6[%c0_12, %c0_13] : memref<256x128xbf16, #tpu.memory_space<vmem>>, vector<256x128xbf16>
    %cst_14 = arith.constant dense<0.000000e+00> : vector<2x128xf32>
    %19 = tpu.matmul %17, %18, %cst_14 {dimension_numbers = #tpu.dot_dimension_numbers<[1], [0], [0], [1], [0, 0, 1, 1], [], []>} : vector<2x256xbf16>, vector<256x128xbf16>, vector<2x128xf32> -> vector<2x128xf32>
    %c0_15 = arith.constant 0 : index
    %c0_16 = arith.constant 0 : index
    %20 = vector.load %arg7[%c0_15, %c0_16] : memref<1x128xf32, #tpu.memory_space<vmem>>, vector<1x128xf32>
    %21 = vector.broadcast %20 : vector<1x128xf32> to vector<2x128xf32>
    %22 = arith.addf %19, %21 : vector<2x128xf32>
    %c0_17 = arith.constant 0 : index
    %c0_18 = arith.constant 0 : index
    %23 = vector.load %arg8[%c0_17, %c0_18] : memref<2x128xf32, #tpu.memory_space<vmem>>, vector<2x128xf32>
    tpu.vector_store %arg8[%c0_17, %c0_18], %22 {strides = array<i32>} : memref<2x128xf32, #tpu.memory_space<vmem>>, vector<2x128xf32>,
    return
  }
  func.func @transform_0(%arg0: i32) -> (i32, i32) {
    %c0_i32 = arith.constant 0 : i32
    %c0_i32_0 = arith.constant 0 : i32
    return %arg0, %c0_i32 : i32, i32
  }
  func.func @transform_1(%arg0: i32) -> (i32, i32) {
    %c0_i32 = arith.constant 0 : i32
    %c0_i32_0 = arith.constant 0 : i32
    %c0_i32_1 = arith.constant 0 : i32
    return %c0_i32, %c0_i32_0 : i32, i32
  }
  func.func @transform_2(%arg0: i32) -> (i32, i32) {
    %c0_i32 = arith.constant 0 : i32
    %c0_i32_0 = arith.constant 0 : i32
    %c0_i32_1 = arith.constant 0 : i32
    return %c0_i32, %c0_i32_0 : i32, i32
  }
  func.func @transform_3(%arg0: i32) -> (i32, i32) {
    %c0_i32 = arith.constant 0 : i32
    %c0_i32_0 = arith.constant 0 : i32
    %c0_i32_1 = arith.constant 0 : i32
    return %c0_i32, %c0_i32_0 : i32, i32
  }
  func.func @transform_4(%arg0: i32) -> (i32, i32) {
    %c0_i32 = arith.constant 0 : i32
    %c0_i32_0 = arith.constant 0 : i32
    %c0_i32_1 = arith.constant 0 : i32
    return %c0_i32, %c0_i32_0 : i32, i32
  }
  func.func @transform_5(%arg0: i32) -> (i32, i32) {
    %c0_i32 = arith.constant 0 : i32
    %c0_i32_0 = arith.constant 0 : i32
    %c0_i32_1 = arith.constant 0 : i32
    return %c0_i32, %c0_i32_0 : i32, i32
  }
  func.func @transform_6(%arg0: i32) -> (i32, i32) {
    %c0_i32 = arith.constant 0 : i32
    %c0_i32_0 = arith.constant 0 : i32
    %c0_i32_1 = arith.constant 0 : i32
    return %c0_i32, %c0_i32_0 : i32, i32
  }
  func.func @transform_7(%arg0: i32) -> (i32, i32) {
    %c0_i32 = arith.constant 0 : i32
    %c0_i32_0 = arith.constant 0 : i32
    return %arg0, %c0_i32 : i32, i32
  }
}

</mosaic_0001>

<bundles_post_ra>
// kernel: tpu_custom_call.1
= control target key start
LH: loop header
LB: loop body
LE: loop exit
PB: predicated region body
PF: predicated region fallthrough
CT: control target
= control target key end

     0   :  { %12 = vsyncpa [#allocation3], 0  ;;  %s3481_s0 = inlined_call_operand.hbm [shape: f32[2,784], index: 0, kind: input, shape index: {}]   ;;  %s3482_s1 = inlined_call_operand.hbm [shape: bf16[784,512], index: 1, kind: input, shape index: {}]   ;;  %s3483_s2 = inlined_call_operand.vmem [shape: bf16[1,512], index: 2, kind: input, shape index: {}]   ;;  %s3484_s3 = inlined_call_operand.hbm [shape: bf16[512,256], index: 3, kind: input, shape index: {}]   ;;  %s3485_s4 = inlined_call_operand.vmem [shape: bf16[1,256], index: 4, kind: input, shape index: {}]   ;;  %s3486_s5 = inlined_call_operand.hbm [shape: bf16[256,128], index: 5, kind: input, shape index: {}]   ;;  %s3487_s6 = inlined_call_operand.vmem [shape: f32[1,128], index: 6, kind: input, shape index: {}]   ;;  %s3488_s7 = inlined_call_operand.hbm [shape: f32[2,128], index: 7, kind: output, shape index: {}]  }
   0x1   :  { %13 = vsyncpa [#allocation6], 0 }
   0x2   :  { %14 = vsyncpa [#allocation9], 0 }
   0x3   :  { %15 = vsyncpa [#allocation4], 0  ;;  %s3276_s24 = smov [#allocation5]   ;;  %s3158_s28 = scalar_lea.hbm %s3482_s1, 25088 }
   0x4   :  { %s31_s25 = sshll.u32 %s3276_s24, 4  ;;  %p3159_p0 = scmp.ne.s32.totalorder %s3482_s1, %s3158_s28  ;;  %s32_s25 = int_to_ptr.vmem [resolvable:$true] %s31_s25 }
   0x5   :  { %p3162_p1 = scmp.lt.u32.totalorder %s3158_s28, %s3482_s1 }
   0x7   :  { %p3164_p2 = pnand %p3162_p1, %p3159_p0 }
   0x9   :  { %3167 = shalt.err (!%p3164_p2)
}
   0xa   :  { %s3168_s10 = scalar_lea.vmem %s32_s25, 25088  ;;  %p3173_p4 = scmp.lt.s32.totalorder %s32_s25, %s32_s25 }
   0xb   :  { %p3169_p3 = scmp.ne.s32.totalorder %s32_s25, %s3168_s10  ;;  %p3174_p5 = scmp.lt.s32.totalorder %s3168_s10, %s3168_s10 }
   0xd   :  { %p3175_p6 = por %p3174_p5, %p3173_p4 }
   0xf   :  { %p3176_p7 = pnand %p3175_p6, %p3169_p3 }
  0x11   :  { %3179 = shalt.err (!%p3176_p7)
}
  0x12   :  { %s3277_s11 = smov 256   ;;  %s3278_s12 = smov 16  }
  0x13   :  { %37 = dma.hbm_to_vmem [thread:$0]  %s3482_s1, 25088, %s32_s25, [#allocation6], %s3277_s11, %s3277_s11, %s3278_s12  }
  0x14   :  { %s3279_s15 = smov [#allocation2]   ;;  %s3280_s17 = smov [#allocation7]  }
  0x15   :  { %s22_s16 = sshll.u32 %s3279_s15, 4  ;;  %s45_s18 = sshll.u32 %s3280_s17, 4  ;;  %s23_s16 = int_to_ptr.vmem [resolvable:$true] %s22_s16  ;;  %s46_s18 = int_to_ptr.vmem [resolvable:$true] %s45_s18 }
  0x16   :  { %s3180_s21 = scalar_lea.hbm %s3481_s0, 224 }
  0x17   :  { %p3181_p8 = scmp.ne.s32.totalorder %s3481_s0, %s3180_s21  ;;  %p3184_p9 = scmp.lt.u32.totalorder %s3180_s21, %s3481_s0 }
  0x19   :  { %p3186_p10 = pnand %p3184_p9, %p3181_p8 }
  0x1b   :  { %3189 = shalt.err (!%p3186_p10)
}
  0x1c   :  { %s3190_s1 = scalar_lea.vmem %s23_s16, 224  ;;  %p3195_p12 = scmp.lt.s32.totalorder %s23_s16, %s23_s16 }
  0x1d   :  { %p3191_p11 = scmp.ne.s32.totalorder %s23_s16, %s3190_s1  ;;  %p3196_p13 = scmp.lt.s32.totalorder %s3190_s1, %s3190_s1 }
  0x1f   :  { %p3197_p0 = por %p3196_p13, %p3195_p12 }
  0x21   :  { %p3198_p1 = pnand %p3197_p0, %p3191_p11 }
  0x23   :  { %3201 = shalt.err (!%p3198_p1)
}
  0x24   :  { %25 = dma.hbm_to_vmem [thread:$0]  %s3481_s0, 224, %s23_s16, [#allocation3]  }
  0x25   :  { %s3202_s30 = scalar_lea.hbm %s3484_s3, 8192 }
  0x26   :  { %p3203_p2 = scmp.ne.s32.totalorder %s3484_s3, %s3202_s30  ;;  %p3206_p3 = scmp.lt.u32.totalorder %s3202_s30, %s3484_s3 }
  0x28   :  { %p3208_p4 = pnand %p3206_p3, %p3203_p2 }
  0x2a   :  { %3211 = shalt.err (!%p3208_p4)
}
  0x2b   :  { %s3212_s12 = scalar_lea.vmem %s46_s18, 8192  ;;  %p3217_p6 = scmp.lt.s32.totalorder %s46_s18, %s46_s18 }
  0x2c   :  { %p3213_p5 = scmp.ne.s32.totalorder %s46_s18, %s3212_s12  ;;  %p3218_p7 = scmp.lt.s32.totalorder %s3212_s12, %s3212_s12 }
  0x2e   :  { %p3219_p8 = por %p3218_p7, %p3217_p6 }
  0x30   :  { %p3220_p9 = pnand %p3219_p8, %p3213_p5 }
  0x32   :  { %3223 = shalt.err (!%p3220_p9)
}
  0x33   :  { %s3281_s0 = smov 128   ;;  %s3282_s13 = smov 8  }
  0x34   :  { %51 = dma.hbm_to_vmem [thread:$0]  %s3484_s3, 8192, %s46_s18, [#allocation6], %s3281_s0, %s3281_s0, %s3282_s13  }
  0x35   :  { %s3283_s16 = smov [#allocation8]   ;;  %s3224_s21 = scalar_lea.hbm %s3486_s5, 2048 }
  0x36   :  { %s59_s17 = sshll.u32 %s3283_s16, 4  ;;  %p3225_p10 = scmp.ne.s32.totalorder %s3486_s5, %s3224_s21  ;;  %s60_s17 = int_to_ptr.vmem [resolvable:$true] %s59_s17 }
  0x37   :  { %p3228_p11 = scmp.lt.u32.totalorder %s3224_s21, %s3486_s5 }
  0x39   :  { %p3230_p12 = pnand %p3228_p11, %p3225_p10 }
  0x3b   :  { %3233 = shalt.err (!%p3230_p12)
}
  0x3c   :  { %s3234_s1 = scalar_lea.vmem %s60_s17, 2048  ;;  %p3239_p0 = scmp.lt.s32.totalorder %s60_s17, %s60_s17 }
  0x3d   :  { %p3235_p13 = scmp.ne.s32.totalorder %s60_s17, %s3234_s1  ;;  %p3240_p1 = scmp.lt.s32.totalorder %s3234_s1, %s3234_s1 }
  0x3f   :  { %p3241_p2 = por %p3240_p1, %p3239_p0 }
  0x41   :  { %p3242_p3 = pnand %p3241_p2, %p3235_p13 }
  0x43   :  { %3245 = shalt.err (!%p3242_p3)
}
  0x44   :  { %s3284_s3 = smov 64   ;;  %s3285_s18 = smov 4  }
  0x45   :  { %65 = dma.hbm_to_vmem [thread:$0]  %s3486_s5, 2048, %s60_s17, [#allocation9], %s3284_s3, %s3284_s3, %s3285_s18  }
  0x46   :  { %3268 = dma.done.wait [#allocation3], 224  }
  0x47   :  { %3269 = vsyncadd [#allocation3], 4294967072 }
  0x48   :  { %3270 = dma.done.wait [#allocation6], 33280  }
  0x49   :  { %3271 = vsyncadd [#allocation6], 4294934016 }
  0x4a   :  { %3272 = dma.done.wait [#allocation9], 2048  }
  0x4b   :  { %3273 = vsyncadd [#allocation9], 4294965248  ;;  %v2750_v0 = vld [vmem:[#allocation5 + $0x4] ss:$16 sps:$4 sm:$0xff]   ;;  %v2754_v2 = vld [vmem:[#allocation5] ss:$16 sps:$4 sm:$0xff]   ;;  %v89_v38 = vlaneseq }
  0x4c   :  { %v2752_v1 = vld [vmem:[#allocation5 + $0x204] ss:$16 sps:$4 sm:$0xff]   ;;  %1312 = vmatprep.subr.bf16.mxu1 %v2750_v0  ;;  %v2755_v3 = vld [vmem:[#allocation5 + $0x200] ss:$16 sps:$4 sm:$0xff]   ;;  %v3286_v36 = vmov 1983009808  }
  0x4d   :  { %1353 = vmatprep.subr.bf16.mxu0 %v2752_v1  ;;  %v2756_v4 = vld [vmem:[#allocation5 + $0x24] ss:$16 sps:$4 sm:$0xff]   ;;  %1313 = vmatpush1.bf16.msra.mxu1 %v2754_v2  ;;  %v2760_v6 = vld [vmem:[#allocation5 + $0x20] ss:$16 sps:$4 sm:$0xff]   ;;  %v87_v37 = vunpack.c.l.s4 %v3286_v36  ;;  %v3378_v43 = vshrl.u32 %v89_v38, 7  ;;  %vm1308_vm0 = vcmask 130048  }
  0x4e   :  { %1354 = vmatpush1.bf16.msra.mxu0 %v2755_v3  ;;  %v2758_v5 = vld [vmem:[#allocation5 + $0x224] ss:$16 sps:$4 sm:$0xff]   ;;  %1314 = vmatprep.subr.bf16.mxu1 %v2756_v4  ;;  %v2761_v7 = vld [vmem:[#allocation5 + $0x220] ss:$16 sps:$4 sm:$0xff]   ;;  %s3289_s8 = smov [#allocation10]  }
  0x4f   :  { %1355 = vmatprep.subr.bf16.mxu0 %v2758_v5  ;;  %v2762_v8 = vld [vmem:[#allocation5 + $0x44] ss:$16 sps:$4 sm:$0xff]   ;;  %v2766_v10 = vld [vmem:[#allocation5 + $0x40] ss:$16 sps:$4 sm:$0xff]   ;;  %v88_v42 = vunpack.c.0.s8 %v87_v37  ;;  %v2882_v37 = vld [vmem:[#allocation5 + $0xac] ss:$16 sps:$4 sm:$0xff]  }
  0x50   :  { %v2764_v9 = vld [vmem:[#allocation5 + $0x244] ss:$16 sps:$4 sm:$0xff]   ;;  %v2767_v11 = vld [vmem:[#allocation5 + $0x240] ss:$16 sps:$4 sm:$0xff]   ;;  %s2398_s9 = sshll.u32 %s3289_s8, 4  ;;  %s2399_s9 = int_to_ptr.vmem [resolvable:$true] %s2398_s9 }
  0x51   :  { %1315 = vmatpush1.bf16.msra.mxu1 %v2760_v6  ;;  %v2768_v12 = vld [vmem:[#allocation5 + $0x64] ss:$16 sps:$4 sm:$0xff]   ;;  %v2772_v14 = vld [vmem:[#allocation5 + $0x60] ss:$16 sps:$4 sm:$0xff]   ;;  %v3381_v49 = vsub.s32 %v88_v42, %v3378_v43  ;;  %v3394_v42 = vld [vmem:[#allocation2 + $0x8] sm:$0x3f]  ;;  %p3251_p5 = scmp.lt.s32.totalorder %s2399_s9, %s2399_s9 }
  0x52   :  { %1356 = vmatpush1.bf16.msra.mxu0 %v2761_v7  ;;  %1316 = vmatprep.subr.bf16.mxu1 %v2762_v8  ;;  %v2770_v13 = vld [vmem:[#allocation5 + $0x264] ss:$16 sps:$4 sm:$0xff]   ;;  %v2773_v15 = vld [vmem:[#allocation5 + $0x260] ss:$16 sps:$4 sm:$0xff]   ;;  %s3246_s10 = scalar_lea.vmem %s2399_s9, 32 }
  0x53   :  { %1357 = vmatprep.subr.bf16.mxu0 %v2764_v9  ;;  %v2774_v16 = vld [vmem:[#allocation5 + $0x84] ss:$16 sps:$4 sm:$0xff]   ;;  %v2778_v18 = vld [vmem:[#allocation5 + $0x80] ss:$16 sps:$4 sm:$0xff]   ;;  %p3247_p4 = scmp.ne.s32.totalorder %s2399_s9, %s3246_s10  ;;  %p3252_p6 = scmp.lt.s32.totalorder %s3246_s10, %s3246_s10 }
  0x54   :  { %v2776_v17 = vld [vmem:[#allocation5 + $0x284] ss:$16 sps:$4 sm:$0xff]   ;;  %v2779_v19 = vld [vmem:[#allocation5 + $0x280] ss:$16 sps:$4 sm:$0xff]  }
  0x55   :  { %1317 = vmatpush1.bf16.msra.mxu1 %v2766_v10  ;;  %v2780_v20 = vld [vmem:[#allocation5 + $0xa4] ss:$16 sps:$4 sm:$0xff]   ;;  %v2784_v22 = vld [vmem:[#allocation5 + $0xa0] ss:$16 sps:$4 sm:$0xff]   ;;  %p3253_p7 = por %p3252_p6, %p3251_p5 }
  0x56   :  { %1358 = vmatpush1.bf16.msra.mxu0 %v2767_v11  ;;  %1318 = vmatprep.subr.bf16.mxu1 %v2768_v12  ;;  %v2782_v21 = vld [vmem:[#allocation5 + $0x2a4] ss:$16 sps:$4 sm:$0xff]   ;;  %v2785_v23 = vld [vmem:[#allocation5 + $0x2a0] ss:$16 sps:$4 sm:$0xff]  }
  0x57   :  { %1359 = vmatprep.subr.bf16.mxu0 %v2770_v13  ;;  %v2786_v24 = vld [vmem:[#allocation5 + $0xc4] ss:$16 sps:$4 sm:$0xff]   ;;  %v2790_v26 = vld [vmem:[#allocation5 + $0xc0] ss:$16 sps:$4 sm:$0xff]   ;;  %p3254_p8 = pnand %p3253_p7, %p3247_p4 }
  0x58   :  { %v2788_v25 = vld [vmem:[#allocation5 + $0x2c4] ss:$16 sps:$4 sm:$0xff]   ;;  %v2791_v27 = vld [vmem:[#allocation5 + $0x2c0] ss:$16 sps:$4 sm:$0xff]  }
  0x59   :  { %1319 = vmatpush1.bf16.msra.mxu1 %v2772_v14  ;;  %v2792_v28 = vld [vmem:[#allocation5 + $0xe4] ss:$16 sps:$4 sm:$0xff]   ;;  %v2796_v30 = vld [vmem:[#allocation5 + $0xe0] ss:$16 sps:$4 sm:$0xff]  }
  0x5a   :  { %1360 = vmatpush1.bf16.msra.mxu0 %v2773_v15  ;;  %1320 = vmatprep.subr.bf16.mxu1 %v2774_v16  ;;  %v2794_v29 = vld [vmem:[#allocation5 + $0x2e4] ss:$16 sps:$4 sm:$0xff]   ;;  %v2797_v31 = vld [vmem:[#allocation5 + $0x2e0] ss:$16 sps:$4 sm:$0xff]   ;;  %v2852_v15 = vld [vmem:[#allocation5 + $0xc] ss:$16 sps:$4 sm:$0xff]  }
  0x5b   :  { %1361 = vmatprep.subr.bf16.mxu0 %v2776_v17  ;;  %v2798_v32 = vld [vmem:[#allocation5 + $0x104] ss:$16 sps:$4 sm:$0xff]   ;;  %v2802_v34 = vld [vmem:[#allocation5 + $0x100] ss:$16 sps:$4 sm:$0xff]  }
  0x5c   :  { %v2800_v33 = vld [vmem:[#allocation5 + $0x304] ss:$16 sps:$4 sm:$0xff]   ;;  %v2803_v35 = vld [vmem:[#allocation5 + $0x300] ss:$16 sps:$4 sm:$0xff]  }
  0x5d   :  { %1321 = vmatpush1.bf16.msra.mxu1 %v2778_v18  ;;  %v2804_v39 = vld [vmem:[#allocation5 + $0x124] ss:$16 sps:$4 sm:$0xff]   ;;  %v2808_v41 = vld [vmem:[#allocation5 + $0x120] ss:$16 sps:$4 sm:$0xff]  }
  0x5e   :  { %1362 = vmatpush1.bf16.msra.mxu0 %v2779_v19  ;;  %1322 = vmatprep.subr.bf16.mxu1 %v2780_v20  ;;  %v2806_v40 = vld [vmem:[#allocation5 + $0x324] ss:$16 sps:$4 sm:$0xff]   ;;  %v2809_v44 = vld [vmem:[#allocation5 + $0x320] ss:$16 sps:$4 sm:$0xff]   ;;  %v2850_v19 = vld [vmem:[#allocation5 + $0x8] ss:$16 sps:$4 sm:$0xff]  }
  0x5f   :  { %1363 = vmatprep.subr.bf16.mxu0 %v2782_v21  ;;  %v2810_v45 = vld [vmem:[#allocation5 + $0x144] ss:$16 sps:$4 sm:$0xff]   ;;  %v2814_v47 = vld [vmem:[#allocation5 + $0x140] ss:$16 sps:$4 sm:$0xff]   ;;  %v2858_v21 = vld [vmem:[#allocation5 + $0x2c] ss:$16 sps:$4 sm:$0xff]  }
  0x60   :  { %v2812_v46 = vld [vmem:[#allocation5 + $0x344] ss:$16 sps:$4 sm:$0xff]   ;;  %v2815_v48 = vld [vmem:[#allocation5 + $0x340] ss:$16 sps:$4 sm:$0xff]  }
  0x61   :  { %1323 = vmatpush1.bf16.msra.mxu1 %v2784_v22  ;;  %v2816_v50 = vld [vmem:[#allocation5 + $0x164] ss:$16 sps:$4 sm:$0xff]   ;;  %v2820_v53 = vld [vmem:[#allocation5 + $0x160] ss:$16 sps:$4 sm:$0xff]  }
  0x62   :  { %1364 = vmatpush1.bf16.msra.mxu0 %v2785_v23  ;;  %1324 = vmatprep.subr.bf16.mxu1 %v2786_v24  ;;  %v2818_v51 = vld [vmem:[#allocation5 + $0x364] ss:$16 sps:$4 sm:$0xff]   ;;  %v2821_v56 = vld [vmem:[#allocation5 + $0x360] ss:$16 sps:$4 sm:$0xff]   ;;  %v2856_v23 = vld [vmem:[#allocation5 + $0x28] ss:$16 sps:$4 sm:$0xff]  }
  0x63   :  { %1365 = vmatprep.subr.bf16.mxu0 %v2788_v25  ;;  %v81_v52 = vld [vmem:[#allocation2] sm:$0xff]  ;;  %v2864_v25 = vld [vmem:[#allocation5 + $0x4c] ss:$16 sps:$4 sm:$0xff]  }
  0x64   :  { %v92_v54 = vrot.slane %v81_v52, %v3381_v49  ;;  %v85_v55 = vcombine.high %v81_v52, %v81_v52  ;;  %v2822_v57 = vld [vmem:[#allocation5 + $0x184] ss:$16 sps:$4 sm:$0xff]   ;;  %v2826_v61 = vld [vmem:[#allocation5 + $0x180] ss:$16 sps:$4 sm:$0xff]  }
  0x65   :  { %1325 = vmatpush1.bf16.msra.mxu1 %v2790_v26  ;;  %v2824_v58 = vld [vmem:[#allocation5 + $0x384] ss:$16 sps:$4 sm:$0xff]   ;;  %v2827_v0 = vld [vmem:[#allocation5 + $0x380] ss:$16 sps:$4 sm:$0xff]  }
  0x66   :  { %1366 = vmatpush1.bf16.msra.mxu0 %v2791_v27  ;;  %1326 = vmatprep.subr.bf16.mxu1 %v2792_v28  ;;  %v100_v59 = vcombine.high %v92_v54, %v92_v54  ;;  %v99_v60 = vrot.slane %v85_v55, %v3381_v49  ;;  %v2828_v1 = vld [vmem:[#allocation5 + $0x1a4] ss:$16 sps:$4 sm:$0xff]   ;;  %v2832_v4 = vld [vmem:[#allocation5 + $0x1a0] ss:$16 sps:$4 sm:$0xff]   ;;  %v3388_v16 = vpack.c.bf16 %v92_v54, %v92_v54  ;;  %v2862_v27 = vld [vmem:[#allocation5 + $0x48] ss:$16 sps:$4 sm:$0xff]  }
  0x67   :  { %1367 = vmatprep.subr.bf16.mxu0 %v2794_v29  ;;  %v2830_v2 = vld [vmem:[#allocation5 + $0x3a4] ss:$16 sps:$4 sm:$0xff]   ;;  %v2833_v5 = vld [vmem:[#allocation5 + $0x3a0] ss:$16 sps:$4 sm:$0xff]   ;;  %v2870_v29 = vld [vmem:[#allocation5 + $0x6c] ss:$16 sps:$4 sm:$0xff]  }
  0x68   :  { %v126_v62 = vpack.c.bf16 %v100_v59, %v100_v59  ;;  %v101_v63 = vcombine.high %v99_v60, %v99_v60  ;;  %v2834_v6 = vld [vmem:[#allocation5 + $0x1c4] ss:$16 sps:$4 sm:$0xff]   ;;  %v2838_v8 = vld [vmem:[#allocation5 + $0x1c0] ss:$16 sps:$4 sm:$0xff]   ;;  %v3390_v18 = vpack.c.bf16 %v99_v60, %v99_v60  ;;  %v2900_v55 = vld [vmem:[#allocation5 + $0x10c] ss:$16 sps:$4 sm:$0xff]  }
  0x69   :  { %1327 = vmatpush1.bf16.msra.mxu1 %v2796_v30  ;;  %v2836_v7 = vld [vmem:[#allocation5 + $0x3c4] ss:$16 sps:$4 sm:$0xff]   ;;  %v2839_v9 = vld [vmem:[#allocation5 + $0x3c0] ss:$16 sps:$4 sm:$0xff]   ;;  %v2906_v59 = vld [vmem:[#allocation5 + $0x12c] ss:$16 sps:$4 sm:$0xff]  }
  0x6a   :  { %1368 = vmatpush1.bf16.msra.mxu0 %v2797_v31  ;;  %1328 = vmatprep.subr.bf16.mxu1 %v2798_v32  ;;  %v3385_v3 = vpack.c.bf16 %v101_v63, %v101_v63  ;;  %v2840_v10 = vld [vmem:[#allocation5 + $0x1e4] ss:$16 sps:$4 sm:$0xff]   ;;  %v2844_v12 = vld [vmem:[#allocation5 + $0x1e0] ss:$16 sps:$4 sm:$0xff]   ;;  %v2868_v31 = vld [vmem:[#allocation5 + $0x68] ss:$16 sps:$4 sm:$0xff]  }
  0x6b   :  { %1369 = vmatprep.subr.bf16.mxu0 %v2800_v33  ;;  %1344 = vmatprep.mubr.bf16.mxu1 %v126_v62  ;;  %v2842_v11 = vld [vmem:[#allocation5 + $0x3e4] ss:$16 sps:$4 sm:$0xff]   ;;  %v2845_v13 = vld [vmem:[#allocation5 + $0x3e0] ss:$16 sps:$4 sm:$0xff]   ;;  %v2876_v33 = vld [vmem:[#allocation5 + $0x8c] ss:$16 sps:$4 sm:$0xff]  }
  0x6c   :  { %1385 = vmatprep.mubr.bf16.mxu0 %v3385_v3  ;;  %v2849_v14 = vld [vmem:[#allocation5 + $0x404] ss:$16 sps:$4 sm:$0xff]   ;;  %v2847_v17 = vld [vmem:[#allocation5 + $0x400] ss:$16 sps:$4 sm:$0xff]   ;;  %v2912_v63 = vld [vmem:[#allocation5 + $0x14c] ss:$16 sps:$4 sm:$0xff]  }
  0x6d   :  { %1329 = vmatpush1.bf16.msra.mxu1 %v2802_v34  ;;  %v2855_v20 = vld [vmem:[#allocation5 + $0x424] ss:$16 sps:$4 sm:$0xff]   ;;  %v2853_v22 = vld [vmem:[#allocation5 + $0x420] ss:$16 sps:$4 sm:$0xff]  }
  0x6e   :  { %1370 = vmatpush1.bf16.msra.mxu0 %v2803_v35  ;;  %1330 = vmatprep.subr.bf16.mxu1 %v2804_v39  ;;  %v2861_v24 = vld [vmem:[#allocation5 + $0x444] ss:$16 sps:$4 sm:$0xff]   ;;  %v2859_v26 = vld [vmem:[#allocation5 + $0x440] ss:$16 sps:$4 sm:$0xff]   ;;  %v2874_v35 = vld [vmem:[#allocation5 + $0x88] ss:$16 sps:$4 sm:$0xff]  }
  0x6f   :  { %1371 = vmatprep.subr.bf16.mxu0 %v2806_v40  ;;  %v2867_v28 = vld [vmem:[#allocation5 + $0x464] ss:$16 sps:$4 sm:$0xff]   ;;  %v2865_v30 = vld [vmem:[#allocation5 + $0x460] ss:$16 sps:$4 sm:$0xff]   ;;  %v2880_v39 = vld [vmem:[#allocation5 + $0xa8] ss:$16 sps:$4 sm:$0xff]  }
  0x70   :  { %v2873_v32 = vld [vmem:[#allocation5 + $0x484] ss:$16 sps:$4 sm:$0xff]   ;;  %v2871_v34 = vld [vmem:[#allocation5 + $0x480] ss:$16 sps:$4 sm:$0xff]  }
  0x71   :  { %1331 = vmatpush1.bf16.msra.mxu1 %v2808_v41  ;;  %v2879_v36 = vld [vmem:[#allocation5 + $0x4a4] ss:$16 sps:$4 sm:$0xff]   ;;  %v2877_v38 = vld [vmem:[#allocation5 + $0x4a0] ss:$16 sps:$4 sm:$0xff]   ;;  %v2888_v41 = vld [vmem:[#allocation5 + $0xcc] ss:$16 sps:$4 sm:$0xff]  }
  0x72   :  { %1372 = vmatpush1.bf16.msra.mxu0 %v2809_v44  ;;  %1332 = vmatprep.subr.bf16.mxu1 %v2810_v45  ;;  %v2885_v40 = vld [vmem:[#allocation5 + $0x4c4] ss:$16 sps:$4 sm:$0xff]   ;;  %v3398_v44 = vrot.slane %v3394_v42, %v3381_v49  ;;  %v2883_v45 = vld [vmem:[#allocation5 + $0x4c0] ss:$16 sps:$4 sm:$0xff]  }
  0x73   :  { %1373 = vmatprep.subr.bf16.mxu0 %v2812_v46  ;;  %v2886_v46 = vld [vmem:[#allocation5 + $0xc8] ss:$16 sps:$4 sm:$0xff]   ;;  %v2889_v52 = vld [vmem:[#allocation5 + $0x4e0] ss:$16 sps:$4 sm:$0xff]   ;;  %v2897_v54 = vld [vmem:[#allocation5 + $0x504] ss:$16 sps:$4 sm:$0xff]  }
  0x74   :  { %v2901_v60 = vld [vmem:[#allocation5 + $0x520] ss:$16 sps:$4 sm:$0xff]  }
  0x75   :  { %1333 = vmatpush1.bf16.msra.mxu1 %v2814_v47  ;;  %v117_v47 = vcombine.high %v3398_v44, %v3398_v44 }
  0x76   :  { %1374 = vmatpush1.bf16.msra.mxu0 %v2815_v48  ;;  %1334 = vmatprep.subr.bf16.mxu1 %v2816_v50  ;;  %v2891_v48 = vld [vmem:[#allocation5 + $0x4e4] ss:$16 sps:$4 sm:$0xff]   ;;  %v2894_v50 = vld [vmem:[#allocation5 + $0xec] ss:$16 sps:$4 sm:$0xff]  }
  0x77   :  { %1375 = vmatprep.subr.bf16.mxu0 %v2818_v51  ;;  %v3402_v51 = vpack.c.bf16 %v117_v47, %v117_v47  ;;  %v3046_v47 = vld [vmem:[#allocation7] ss:$8 sps:$4 sm:$0xff]  }
  0x79   :  { %1335 = vmatpush1.bf16.msra.mxu1 %v2820_v53  ;;  %v2892_v53 = vld [vmem:[#allocation5 + $0xe8] ss:$16 sps:$4 sm:$0xff]  }
  0x7a   :  { %1376 = vmatpush1.bf16.msra.mxu0 %v2821_v56  ;;  %1336 = vmatprep.subr.bf16.mxu1 %v2822_v57  ;;  %v2895_v56 = vld [vmem:[#allocation5 + $0x500] ss:$16 sps:$4 sm:$0xff]   ;;  %v2898_v57 = vld [vmem:[#allocation5 + $0x108] ss:$16 sps:$4 sm:$0xff]  }
  0x7b   :  { %1377 = vmatprep.subr.bf16.mxu0 %v2824_v58  ;;  %v2903_v58 = vld [vmem:[#allocation5 + $0x524] ss:$16 sps:$4 sm:$0xff]  }
  0x7d   :  { %1337 = vmatpush1.bf16.msra.mxu1 %v2826_v61  ;;  %v2904_v61 = vld [vmem:[#allocation5 + $0x128] ss:$16 sps:$4 sm:$0xff]  }
  0x7e   :  { %1378 = vmatpush1.bf16.msra.mxu0 %v2827_v0  ;;  %1338 = vmatprep.subr.bf16.mxu1 %v2828_v1  ;;  %v2907_v0 = vld [vmem:[#allocation5 + $0x540] ss:$16 sps:$4 sm:$0xff]   ;;  %v2910_v1 = vld [vmem:[#allocation5 + $0x148] ss:$16 sps:$4 sm:$0xff]  }
  0x7f   :  { %1379 = vmatprep.subr.bf16.mxu0 %v2830_v2  ;;  %v2915_v2 = vld [vmem:[#allocation5 + $0x564] ss:$16 sps:$4 sm:$0xff]  }
  0x81   :  { %1339 = vmatpush1.bf16.msra.mxu1 %v2832_v4  ;;  %v2918_v4 = vld [vmem:[#allocation5 + $0x16c] ss:$16 sps:$4 sm:$0xff]  }
  0x82   :  { %1380 = vmatpush1.bf16.msra.mxu0 %v2833_v5  ;;  %1340 = vmatprep.subr.bf16.mxu1 %v2834_v6  ;;  %v2913_v5 = vld [vmem:[#allocation5 + $0x560] ss:$16 sps:$4 sm:$0xff]   ;;  %v2916_v6 = vld [vmem:[#allocation5 + $0x168] ss:$16 sps:$4 sm:$0xff]  }
  0x83   :  { %1381 = vmatprep.subr.bf16.mxu0 %v2836_v7  ;;  %v2921_v7 = vld [vmem:[#allocation5 + $0x584] ss:$16 sps:$4 sm:$0xff]  }
  0x85   :  { %1341 = vmatpush1.bf16.msra.mxu1 %v2838_v8  ;;  %v2924_v8 = vld [vmem:[#allocation5 + $0x18c] ss:$16 sps:$4 sm:$0xff]  }
  0x86   :  { %1382 = vmatpush1.bf16.msra.mxu0 %v2839_v9  ;;  %1342 = vmatprep.subr.bf16.mxu1 %v2840_v10  ;;  %v2919_v9 = vld [vmem:[#allocation5 + $0x580] ss:$16 sps:$4 sm:$0xff]   ;;  %v2922_v10 = vld [vmem:[#allocation5 + $0x188] ss:$16 sps:$4 sm:$0xff]  }
  0x87   :  { %1383 = vmatprep.subr.bf16.mxu0 %v2842_v11  ;;  %v2927_v11 = vld [vmem:[#allocation5 + $0x5a4] ss:$16 sps:$4 sm:$0xff]  }
  0x89   :  { %1343 = vmatpush1.bf16.msra.mxu1 %v2844_v12  ;;  %v2930_v12 = vld [vmem:[#allocation5 + $0x1ac] ss:$16 sps:$4 sm:$0xff]  }
  0x8a   :  { %1384 = vmatpush1.bf16.msra.mxu0 %v2845_v13  ;;  %1476 = vmatprep.subr.bf16.mxu1 %v2852_v15  ;;  %v2925_v13 = vld [vmem:[#allocation5 + $0x5a0] ss:$16 sps:$4 sm:$0xff]   ;;  %v2933_v15 = vld [vmem:[#allocation5 + $0x5c4] ss:$16 sps:$4 sm:$0xff]  }
  0x8b   :  { %1394 = vmatprep.subr.bf16.mxu0 %v2849_v14  ;;  %v2928_v14 = vld [vmem:[#allocation5 + $0x1a8] ss:$16 sps:$4 sm:$0xff]  }
  0x8c   :  { %1345 = vmatmul.mubr.bf16.vlgmr.msra.gmra.mrb[0].mxu1 %v3388_v16 }
  0x8d   :  { %1386 = vmatmul.mubr.bf16.vlgmr.msra.gmra.mrb[0].mxu0 %v3390_v18  ;;  %1477 = vmatpush1.bf16.msra.mxu1 %v2850_v19  ;;  %v2931_v19 = vld [vmem:[#allocation5 + $0x5c0] ss:$16 sps:$4 sm:$0xff]  }
  0x8e   :  { %1395 = vmatpush1.bf16.msra.mxu0 %v2847_v17  ;;  %1478 = vmatprep.subr.bf16.mxu1 %v2858_v21  ;;  %v2936_v17 = vld [vmem:[#allocation5 + $0x1cc] ss:$16 sps:$4 sm:$0xff]   ;;  %v2939_v21 = vld [vmem:[#allocation5 + $0x5e4] ss:$16 sps:$4 sm:$0xff]  }
  0x8f   :  { %1396 = vmatprep.subr.bf16.mxu0 %v2855_v20  ;;  %1508 = vmatprep.mubr.bf16.mxu1 %v126_v62  ;;  %v2909_v62 = vld [vmem:[#allocation5 + $0x544] ss:$16 sps:$4 sm:$0xff]   ;;  %v2934_v20 = vld [vmem:[#allocation5 + $0x1c8] ss:$16 sps:$4 sm:$0xff]  }
  0x90   :  { %1426 = vmatprep.mubr.bf16.mxu0 %v3402_v51 }
  0x91   :  { %1479 = vmatpush1.bf16.msra.mxu1 %v2856_v23  ;;  %v2937_v23 = vld [vmem:[#allocation5 + $0x5e0] ss:$16 sps:$4 sm:$0xff]  }
  0x92   :  { %1397 = vmatpush1.bf16.msra.mxu0 %v2853_v22  ;;  %1480 = vmatprep.subr.bf16.mxu1 %v2864_v25  ;;  %v2942_v22 = vld [vmem:[#allocation5 + $0x1ec] ss:$16 sps:$4 sm:$0xff]  }
  0x93   :  { %1398 = vmatprep.subr.bf16.mxu0 %v2861_v24  ;;  %v2940_v24 = vld [vmem:[#allocation5 + $0x1e8] ss:$16 sps:$4 sm:$0xff]   ;;  %v2946_v25 = vld [vmem:[#allocation5 + $0x20c] ss:$16 sps:$4 sm:$0xff]  }
  0x95   :  { %1481 = vmatpush1.bf16.msra.mxu1 %v2862_v27  ;;  %v3407_v27 = vpack.c.bf16 %v3398_v44, %v3398_v44  ;;  %v2964_v44 = vld [vmem:[#allocation5 + $0x2ac] ss:$16 sps:$4 sm:$0xff]  }
  0x96   :  { %1399 = vmatpush1.bf16.msra.mxu0 %v2859_v26  ;;  %1482 = vmatprep.subr.bf16.mxu1 %v2870_v29  ;;  %v2952_v26 = vld [vmem:[#allocation5 + $0x604] ss:$16 sps:$4 sm:$0xff]   ;;  %v2950_v29 = vld [vmem:[#allocation5 + $0x600] ss:$16 sps:$4 sm:$0xff]  }
  0x97   :  { %1400 = vmatprep.subr.bf16.mxu0 %v2867_v28  ;;  %v2944_v28 = vld [vmem:[#allocation5 + $0x208] ss:$16 sps:$4 sm:$0xff]  }
  0x99   :  { %1483 = vmatpush1.bf16.msra.mxu1 %v2868_v31  ;;  %v2947_v31 = vld [vmem:[#allocation5 + $0x228] ss:$16 sps:$4 sm:$0xff]  }
  0x9a   :  { %1401 = vmatpush1.bf16.msra.mxu0 %v2865_v30  ;;  %1484 = vmatprep.subr.bf16.mxu1 %v2876_v33  ;;  %v2949_v30 = vld [vmem:[#allocation5 + $0x22c] ss:$16 sps:$4 sm:$0xff]   ;;  %v102_v33 = vcombine.high %v3394_v42, %v3394_v42  ;;  %v2959_v42 = vld [vmem:[#allocation5 + $0x288] ss:$16 sps:$4 sm:$0xff]  }
  0x9b   :  { %1402 = vmatprep.subr.bf16.mxu0 %v2873_v32  ;;  %v3039_v32 = vld [vmem:[#allocation5 + $0x60c] ss:$16 sps:$4 sm:$0xff]  }
  0x9d   :  { %1485 = vmatpush1.bf16.msra.mxu1 %v2874_v35  ;;  %v3287_v35 = vmov 0  }
  0x9e   :  { %1403 = vmatpush1.bf16.msra.mxu0 %v2871_v34  ;;  %1486 = vmatprep.subr.bf16.mxu1 %v2882_v37  ;;  %v2955_v34 = vld [vmem:[#allocation5 + $0x24c] ss:$16 sps:$4 sm:$0xff]   ;;  %v116_v37 = vrot.slane %v102_v33, %v3381_v49 }
  0x9f   :  { %1404 = vmatprep.subr.bf16.mxu0 %v2879_v36  ;;  %v2953_v36 = vld [vmem:[#allocation5 + $0x248] ss:$16 sps:$4 sm:$0xff]   ;;  %v2967_v49 = vld [vmem:[#allocation5 + $0x2cc] ss:$16 sps:$4 sm:$0xff]  }
  0xa0   :  { %v3003_v33 = vld [vmem:[#allocation5 + $0x44c] ss:$16 sps:$4 sm:$0xff]  }
  0xa1   :  { %1487 = vmatpush1.bf16.msra.mxu1 %v2880_v39  ;;  %v2956_v39 = vld [vmem:[#allocation5 + $0x268] ss:$16 sps:$4 sm:$0xff]  }
  0xa2   :  { %1405 = vmatpush1.bf16.msra.mxu0 %v2877_v38  ;;  %1488 = vmatprep.subr.bf16.mxu1 %v2888_v41  ;;  %v2958_v38 = vld [vmem:[#allocation5 + $0x26c] ss:$16 sps:$4 sm:$0xff]   ;;  %v131_v41 = vpack.c.bf16 %v116_v37, %v116_v37  ;;  %v3001_v37 = vld [vmem:[#allocation5 + $0x448] ss:$16 sps:$4 sm:$0xff]  }
  0xa3   :  { %1406 = vmatprep.subr.bf16.mxu0 %v2885_v40  ;;  %v3037_v40 = vld [vmem:[#allocation5 + $0x608] ss:$16 sps:$4 sm:$0xff]  }
  0xa5   :  { %1489 = vmatpush1.bf16.msra.mxu1 %v2886_v46  ;;  %v2970_v46 = vld [vmem:[#allocation5 + $0x2ec] ss:$16 sps:$4 sm:$0xff]  }
  0xa6   :  { %1407 = vmatpush1.bf16.msra.mxu0 %v2883_v45  ;;  %1490 = vmatprep.subr.bf16.mxu1 %v2894_v50  ;;  %v2965_v45 = vld [vmem:[#allocation5 + $0x2c8] ss:$16 sps:$4 sm:$0xff]   ;;  %v3051_v50 = vld [vmem:[#allocation7 + $0x14] ss:$8 sps:$4 sm:$0xff]  }
  0xa7   :  { %1408 = vmatprep.subr.bf16.mxu0 %v2891_v48  ;;  %v3048_v48 = vld [vmem:[#allocation7 + $0x4] ss:$8 sps:$4 sm:$0xff]  }
  0xa9   :  { %1491 = vmatpush1.bf16.msra.mxu1 %v2892_v53  ;;  %v3049_v53 = vld [vmem:[#allocation7 + $0x10] ss:$8 sps:$4 sm:$0xff]  }
  0xaa   :  { %1409 = vmatpush1.bf16.msra.mxu0 %v2889_v52  ;;  %1492 = vmatprep.subr.bf16.mxu1 %v2900_v55  ;;  %v2968_v52 = vld [vmem:[#allocation5 + $0x2e8] ss:$16 sps:$4 sm:$0xff]   ;;  %v3054_v55 = vld [vmem:[#allocation7 + $0x24] ss:$8 sps:$4 sm:$0xff]  }
  0xab   :  { %1410 = vmatprep.subr.bf16.mxu0 %v2897_v54  ;;  %v2973_v54 = vld [vmem:[#allocation5 + $0x30c] ss:$16 sps:$4 sm:$0xff]  }
  0xad   :  { %1493 = vmatpush1.bf16.msra.mxu1 %v2898_v57  ;;  %v3052_v57 = vld [vmem:[#allocation7 + $0x20] ss:$8 sps:$4 sm:$0xff]  }
  0xae   :  { %1411 = vmatpush1.bf16.msra.mxu0 %v2895_v56  ;;  %1494 = vmatprep.subr.bf16.mxu1 %v2906_v59  ;;  %v2971_v56 = vld [vmem:[#allocation5 + $0x308] ss:$16 sps:$4 sm:$0xff]   ;;  %v3057_v59 = vld [vmem:[#allocation7 + $0x34] ss:$8 sps:$4 sm:$0xff]  }
  0xaf   :  { %1412 = vmatprep.subr.bf16.mxu0 %v2903_v58  ;;  %v2976_v58 = vld [vmem:[#allocation5 + $0x32c] ss:$16 sps:$4 sm:$0xff]  }
  0xb1   :  { %1495 = vmatpush1.bf16.msra.mxu1 %v2904_v61  ;;  %v3055_v61 = vld [vmem:[#allocation7 + $0x30] ss:$8 sps:$4 sm:$0xff]  }
  0xb2   :  { %1413 = vmatpush1.bf16.msra.mxu0 %v2901_v60  ;;  %1496 = vmatprep.subr.bf16.mxu1 %v2912_v63  ;;  %v2974_v60 = vld [vmem:[#allocation5 + $0x328] ss:$16 sps:$4 sm:$0xff]   ;;  %v3060_v63 = vld [vmem:[#allocation7 + $0x44] ss:$8 sps:$4 sm:$0xff]  }
  0xb3   :  { %1414 = vmatprep.subr.bf16.mxu0 %v2909_v62  ;;  %v2979_v62 = vld [vmem:[#allocation5 + $0x34c] ss:$16 sps:$4 sm:$0xff]  }
  0xb5   :  { %1497 = vmatpush1.bf16.msra.mxu1 %v2910_v1  ;;  %v3058_v1 = vld [vmem:[#allocation7 + $0x40] ss:$8 sps:$4 sm:$0xff]  }
  0xb6   :  { %1415 = vmatpush1.bf16.msra.mxu0 %v2907_v0  ;;  %1498 = vmatprep.subr.bf16.mxu1 %v2918_v4  ;;  %v2977_v0 = vld [vmem:[#allocation5 + $0x348] ss:$16 sps:$4 sm:$0xff]   ;;  %v3063_v4 = vld [vmem:[#allocation7 + $0x54] ss:$8 sps:$4 sm:$0xff]  }
  0xb7   :  { %1416 = vmatprep.subr.bf16.mxu0 %v2915_v2  ;;  %v2982_v2 = vld [vmem:[#allocation5 + $0x36c] ss:$16 sps:$4 sm:$0xff]  }
  0xb9   :  { %1499 = vmatpush1.bf16.msra.mxu1 %v2916_v6  ;;  %v3061_v6 = vld [vmem:[#allocation7 + $0x50] ss:$8 sps:$4 sm:$0xff]  }
  0xba   :  { %1417 = vmatpush1.bf16.msra.mxu0 %v2913_v5  ;;  %1500 = vmatprep.subr.bf16.mxu1 %v2924_v8  ;;  %v2980_v5 = vld [vmem:[#allocation5 + $0x368] ss:$16 sps:$4 sm:$0xff]   ;;  %v3066_v8 = vld [vmem:[#allocation7 + $0x64] ss:$8 sps:$4 sm:$0xff]  }
  0xbb   :  { %1418 = vmatprep.subr.bf16.mxu0 %v2921_v7  ;;  %v2985_v7 = vld [vmem:[#allocation5 + $0x38c] ss:$16 sps:$4 sm:$0xff]  }
  0xbd   :  { %1501 = vmatpush1.bf16.msra.mxu1 %v2922_v10  ;;  %v3064_v10 = vld [vmem:[#allocation7 + $0x60] ss:$8 sps:$4 sm:$0xff]  }
  0xbe   :  { %1419 = vmatpush1.bf16.msra.mxu0 %v2919_v9  ;;  %1502 = vmatprep.subr.bf16.mxu1 %v2930_v12  ;;  %v2983_v9 = vld [vmem:[#allocation5 + $0x388] ss:$16 sps:$4 sm:$0xff]   ;;  %v3069_v12 = vld [vmem:[#allocation7 + $0x74] ss:$8 sps:$4 sm:$0xff]  }
  0xbf   :  { %1420 = vmatprep.subr.bf16.mxu0 %v2927_v11  ;;  %v2988_v11 = vld [vmem:[#allocation5 + $0x3ac] ss:$16 sps:$4 sm:$0xff]  }
  0xc1   :  { %1503 = vmatpush1.bf16.msra.mxu1 %v2928_v14  ;;  %v3067_v14 = vld [vmem:[#allocation7 + $0x70] ss:$8 sps:$4 sm:$0xff]  }
  0xc2   :  { %1421 = vmatpush1.bf16.msra.mxu0 %v2925_v13  ;;  %1504 = vmatprep.subr.bf16.mxu1 %v2936_v17  ;;  %v2986_v13 = vld [vmem:[#allocation5 + $0x3a8] ss:$16 sps:$4 sm:$0xff]   ;;  %v3072_v17 = vld [vmem:[#allocation7 + $0x84] ss:$8 sps:$4 sm:$0xff]  }
  0xc3   :  { %1422 = vmatprep.subr.bf16.mxu0 %v2933_v15  ;;  %v2991_v15 = vld [vmem:[#allocation5 + $0x3cc] ss:$16 sps:$4 sm:$0xff]  }
  0xc5   :  { %1505 = vmatpush1.bf16.msra.mxu1 %v2934_v20  ;;  %v3070_v20 = vld [vmem:[#allocation7 + $0x80] ss:$8 sps:$4 sm:$0xff]  }
  0xc6   :  { %1423 = vmatpush1.bf16.msra.mxu0 %v2931_v19  ;;  %1506 = vmatprep.subr.bf16.mxu1 %v2942_v22  ;;  %v2989_v19 = vld [vmem:[#allocation5 + $0x3c8] ss:$16 sps:$4 sm:$0xff]   ;;  %v3075_v22 = vld [vmem:[#allocation7 + $0x94] ss:$8 sps:$4 sm:$0xff]  }
  0xc7   :  { %1424 = vmatprep.subr.bf16.mxu0 %v2939_v21  ;;  %v2994_v21 = vld [vmem:[#allocation5 + $0x3ec] ss:$16 sps:$4 sm:$0xff]  }
  0xc9   :  { %1507 = vmatpush1.bf16.msra.mxu1 %v2940_v24  ;;  %v3073_v24 = vld [vmem:[#allocation7 + $0x90] ss:$8 sps:$4 sm:$0xff]  }
  0xca   :  { %1425 = vmatpush1.bf16.msra.mxu0 %v2937_v23  ;;  %1517 = vmatprep.subr.bf16.mxu1 %v2946_v25  ;;  %v2992_v23 = vld [vmem:[#allocation5 + $0x3e8] ss:$16 sps:$4 sm:$0xff]   ;;  %v2997_v25 = vld [vmem:[#allocation5 + $0x40c] ss:$16 sps:$4 sm:$0xff]  }
  0xcb   :  { %1435 = vmatprep.subr.bf16.mxu0 %v2952_v26  ;;  %v3078_v26 = vld [vmem:[#allocation7 + $0xa4] ss:$8 sps:$4 sm:$0xff]  }
  0xcc   :  { %1509 = vmatmul.mubr.bf16.vlgmr.msra.gmra.mrb[4].mxu1 %v3388_v16  ;;  %v2961_v16 = vld [vmem:[#allocation5 + $0x28c] ss:$16 sps:$4 sm:$0xff]  }
  0xcd   :  { %1427 = vmatmul.mubr.bf16.vlgmr.msra.gmra.mrb[0].mxu0 %v3407_v27  ;;  %1518 = vmatpush1.bf16.msra.mxu1 %v2944_v28  ;;  %v2995_v28 = vld [vmem:[#allocation5 + $0x408] ss:$16 sps:$4 sm:$0xff]  }
  0xce   :  { %1436 = vmatpush1.bf16.msra.mxu0 %v2950_v29  ;;  %1519 = vmatprep.subr.bf16.mxu1 %v2949_v30  ;;  %v3000_v29 = vld [vmem:[#allocation5 + $0x42c] ss:$16 sps:$4 sm:$0xff]   ;;  %v3076_v30 = vld [vmem:[#allocation7 + $0xa0] ss:$8 sps:$4 sm:$0xff]  }
  0xcf   :  { %1467 = vmatprep.mubr.bf16.mxu0 %v3287_v35  ;;  %1549 = vmatprep.mubr.bf16.mxu1 %v3385_v3  ;;  %v2962_v3 = vld [vmem:[#allocation5 + $0x2a8] ss:$16 sps:$4 sm:$0xff]  }
  0xd0   :  { %1599 = vmatprep.subr.bf16.mxu0 %v3039_v32  ;;  %v2998_v32 = vld [vmem:[#allocation5 + $0x428] ss:$16 sps:$4 sm:$0xff]  }
  0xd1   :  { %1520 = vmatpush1.bf16.msra.mxu1 %v2947_v31  ;;  %v3081_v31 = vld [vmem:[#allocation7 + $0xb4] ss:$8 sps:$4 sm:$0xff]  }
  0xd2   :  { %1521 = vmatprep.subr.bf16.mxu1 %v2955_v34  ;;  %v3079_v34 = vld [vmem:[#allocation7 + $0xb0] ss:$8 sps:$4 sm:$0xff]  }
  0xd5   :  { %1522 = vmatpush1.bf16.msra.mxu1 %v2953_v36  ;;  %v3084_v36 = vld [vmem:[#allocation7 + $0xc4] ss:$8 sps:$4 sm:$0xff]  }
  0xd6   :  { %1523 = vmatprep.subr.bf16.mxu1 %v2958_v38  ;;  %v3006_v38 = vld [vmem:[#allocation5 + $0x46c] ss:$16 sps:$4 sm:$0xff]  }
  0xd9   :  { %2605 = vmatmul.mubr.msk.bf16.vlgmr.msra.gmra.mrb[0].mxu0 %vm1308_vm0, %v131_v41  ;;  %1524 = vmatpush1.bf16.msra.mxu1 %v2956_v39  ;;  %v3082_v39 = vld [vmem:[#allocation7 + $0xc0] ss:$8 sps:$4 sm:$0xff]  }
  0xda   :  { %1600 = vmatpush1.bf16.msra.mxu0 %v3037_v40  ;;  %1525 = vmatprep.subr.bf16.mxu1 %v2961_v16  ;;  %v3087_v40 = vld [vmem:[#allocation7 + $0xd4] ss:$8 sps:$4 sm:$0xff]   ;;  %v3007_v16 = vld [vmem:[#allocation5 + $0x488] ss:$16 sps:$4 sm:$0xff]  }
  0xdb   :  { %1631 = vmatprep.mubr.bf16.mxu0 %v3287_v35  ;;  %2090 = vmatprep.subr.bf16.mxu0 %v3048_v48  ;;  %v3019_v48 = vld [vmem:[#allocation5 + $0x508] ss:$16 sps:$4 sm:$0xff]  }
  0xdd   :  { %1526 = vmatpush1.bf16.msra.mxu1 %v2959_v42  ;;  %v3012_v42 = vld [vmem:[#allocation5 + $0x4ac] ss:$16 sps:$4 sm:$0xff]  }
  0xde   :  { %1527 = vmatprep.subr.bf16.mxu1 %v2964_v44  ;;  %v3010_v44 = vld [vmem:[#allocation5 + $0x4a8] ss:$16 sps:$4 sm:$0xff]  }
  0xe1   :  { %2606 = vmatmul.mubr.msk.bf16.vlgmr.msra.gmra.mrb[4].mxu0 %vm1308_vm0, %v131_v41  ;;  %1528 = vmatpush1.bf16.msra.mxu1 %v2962_v3  ;;  %v3009_v41 = vld [vmem:[#allocation5 + $0x48c] ss:$16 sps:$4 sm:$0xff]  }
  0xe2   :  { %1529 = vmatprep.subr.bf16.mxu1 %v2967_v49  ;;  %2091 = vmatpush1.bf16.msra.mxu0 %v3046_v47  ;;  %v3015_v3 = vld [vmem:[#allocation5 + $0x4cc] ss:$16 sps:$4 sm:$0xff]   ;;  %v3013_v49 = vld [vmem:[#allocation5 + $0x4c8] ss:$16 sps:$4 sm:$0xff]  }
  0xe3   :  { %2092 = vmatprep.subr.bf16.mxu0 %v3051_v50  ;;  %v3021_v47 = vld [vmem:[#allocation5 + $0x50c] ss:$16 sps:$4 sm:$0xff]  }
  0xe4   :  { %v3024_v50 = vld [vmem:[#allocation5 + $0x52c] ss:$16 sps:$4 sm:$0xff]  }
  0xe5   :  { %1530 = vmatpush1.bf16.msra.mxu1 %v2965_v45  ;;  %v3018_v45 = vld [vmem:[#allocation5 + $0x4ec] ss:$16 sps:$4 sm:$0xff]  }
  0xe6   :  { %1531 = vmatprep.subr.bf16.mxu1 %v2970_v46  ;;  %2093 = vmatpush1.bf16.msra.mxu0 %v3049_v53  ;;  %v3016_v46 = vld [vmem:[#allocation5 + $0x4e8] ss:$16 sps:$4 sm:$0xff]  }
  0xe7   :  { %2094 = vmatprep.subr.bf16.mxu0 %v3054_v55  ;;  %v3022_v53 = vld [vmem:[#allocation5 + $0x528] ss:$16 sps:$4 sm:$0xff]   ;;  %v3027_v55 = vld [vmem:[#allocation5 + $0x54c] ss:$16 sps:$4 sm:$0xff]  }
  0xe9   :  { %1532 = vmatpush1.bf16.msra.mxu1 %v2968_v52  ;;  %v3090_v52 = vld [vmem:[#allocation7 + $0xe4] ss:$8 sps:$4 sm:$0xff]  }
  0xea   :  { %1533 = vmatprep.subr.bf16.mxu1 %v2973_v54  ;;  %2095 = vmatpush1.bf16.msra.mxu0 %v3052_v57  ;;  %v3088_v54 = vld [vmem:[#allocation7 + $0xe0] ss:$8 sps:$4 sm:$0xff]  }
  0xeb   :  { %2096 = vmatprep.subr.bf16.mxu0 %v3057_v59  ;;  %v3025_v57 = vld [vmem:[#allocation5 + $0x548] ss:$16 sps:$4 sm:$0xff]   ;;  %v3030_v59 = vld [vmem:[#allocation5 + $0x56c] ss:$16 sps:$4 sm:$0xff]  }
  0xed   :  { %1534 = vmatpush1.bf16.msra.mxu1 %v2971_v56  ;;  %v3093_v56 = vld [vmem:[#allocation7 + $0xf4] ss:$8 sps:$4 sm:$0xff]  }
  0xee   :  { %1535 = vmatprep.subr.bf16.mxu1 %v2976_v58  ;;  %2097 = vmatpush1.bf16.msra.mxu0 %v3055_v61  ;;  %v3091_v58 = vld [vmem:[#allocation7 + $0xf0] ss:$8 sps:$4 sm:$0xff]   ;;  %v3033_v61 = vld [vmem:[#allocation5 + $0x58c] ss:$16 sps:$4 sm:$0xff]  }
  0xef   :  { %2098 = vmatprep.subr.bf16.mxu0 %v3060_v63  ;;  %v3031_v63 = vld [vmem:[#allocation5 + $0x588] ss:$16 sps:$4 sm:$0xff]  }
  0xf1   :  { %1536 = vmatpush1.bf16.msra.mxu1 %v2974_v60  ;;  %v3028_v60 = vld [vmem:[#allocation5 + $0x568] ss:$16 sps:$4 sm:$0xff]  }
  0xf2   :  { %1537 = vmatprep.subr.bf16.mxu1 %v2979_v62  ;;  %2099 = vmatpush1.bf16.msra.mxu0 %v3058_v1  ;;  %v3096_v62 = vld [vmem:[#allocation7 + $0x104] ss:$8 sps:$4 sm:$0xff]   ;;  %v3034_v1 = vld [vmem:[#allocation5 + $0x5a8] ss:$16 sps:$4 sm:$0xff]  }
  0xf3   :  { %2100 = vmatprep.subr.bf16.mxu0 %v3063_v4  ;;  %v3040_v4 = vld [vmem:[#allocation5 + $0x5c8] ss:$16 sps:$4 sm:$0xff]  }
  0xf5   :  { %1538 = vmatpush1.bf16.msra.mxu1 %v2977_v0  ;;  %v3036_v0 = vld [vmem:[#allocation5 + $0x5ac] ss:$16 sps:$4 sm:$0xff]  }
  0xf6   :  { %1539 = vmatprep.subr.bf16.mxu1 %v2982_v2  ;;  %2101 = vmatpush1.bf16.msra.mxu0 %v3061_v6  ;;  %v3042_v2 = vld [vmem:[#allocation5 + $0x5cc] ss:$16 sps:$4 sm:$0xff]   ;;  %v3043_v6 = vld [vmem:[#allocation5 + $0x5e8] ss:$16 sps:$4 sm:$0xff]  }
  0xf7   :  { %2102 = vmatprep.subr.bf16.mxu0 %v3066_v8 }
  0xf9   :  { %1540 = vmatpush1.bf16.msra.mxu1 %v2980_v5  ;;  %v3045_v5 = vld [vmem:[#allocation5 + $0x5ec] ss:$16 sps:$4 sm:$0xff]  }
  0xfa   :  { %1541 = vmatprep.subr.bf16.mxu1 %v2985_v7  ;;  %2103 = vmatpush1.bf16.msra.mxu0 %v3064_v10 }
  0xfb   :  { %2104 = vmatprep.subr.bf16.mxu0 %v3069_v12 }
  0xfd   :  { %1542 = vmatpush1.bf16.msra.mxu1 %v2983_v9 }
  0xfe   :  { %1543 = vmatprep.subr.bf16.mxu1 %v2988_v11  ;;  %2105 = vmatpush1.bf16.msra.mxu0 %v3067_v14  ;;  %v3288_v11 = vmov 1966171168   ;;  %v2607_v14 = vld.sshfl [vmem:[%s3483_s2] sm:$0x33 pattern:$0x75316420] }
  0xff   :  { %2106 = vmatprep.subr.bf16.mxu0 %v3072_v17  ;;  %v1655_v12 = vunpack.c.l.s4 %v3288_v11  ;;  %v1653_v17 = vcombine.high %v2607_v14, %v2607_v14  ;;  %v3127_v11 = vld [vmem:[#allocation7 + $0x1b0] ss:$8 sps:$4 sm:$0xff]  }
 0x101   :  { %1544 = vmatpush1.bf16.msra.mxu1 %v2986_v13  ;;  %v1656_v13 = vunpack.c.0.s8 %v1655_v12  ;;  %v3132_v12 = vld [vmem:[#allocation7 + $0x1c4] ss:$8 sps:$4 sm:$0xff]  }
 0x102   :  { %1545 = vmatprep.subr.bf16.mxu1 %v2991_v15  ;;  %2107 = vmatpush1.bf16.msra.mxu0 %v3070_v20  ;;  %v3433_v20 = vsub.s32 0, %v3378_v43 }
 0x103   :  { %2108 = vmatprep.subr.bf16.mxu0 %v3075_v22  ;;  %v3424_v15 = vsub.s32 %v1656_v13, %v3378_v43  ;;  %v3130_v13 = vld [vmem:[#allocation7 + $0x1c0] ss:$8 sps:$4 sm:$0xff]  }
 0x105   :  { %1546 = vmatpush1.bf16.msra.mxu1 %v2989_v19  ;;  %v3427_v19 = vrot.slane %v2607_v14, %v3424_v15  ;;  %v3135_v14 = vld [vmem:[#allocation7 + $0x1d4] ss:$8 sps:$4 sm:$0xff]  }
 0x106   :  { %1547 = vmatprep.subr.bf16.mxu1 %v2994_v21  ;;  %2109 = vmatpush1.bf16.msra.mxu0 %v3073_v24  ;;  %v3143_v24 = vld [vmem:[#allocation8] sm:$0xff]  }
 0x107   :  { %2110 = vmatprep.subr.bf16.mxu0 %v3078_v26  ;;  %v1671_v21 = vpack.i.b16 %v3427_v19, %v3427_v19 }
 0x109   :  { %1548 = vmatpush1.bf16.msra.mxu1 %v2992_v23  ;;  %v3142_v23 = vld [vmem:[#allocation8 + $0x40] sm:$0xff]  }
 0x10a   :  { %1558 = vmatprep.subr.bf16.mxu1 %v2997_v25  ;;  %2111 = vmatpush1.bf16.msra.mxu0 %v3076_v30  ;;  %v3144_v25 = vld [vmem:[#allocation8 + $0x48] sm:$0xff]  }
 0x10b   :  { %2112 = vmatprep.subr.bf16.mxu0 %v3081_v31 }
 0x10c   :  { %1550 = vmatmul.mubr.bf16.vlgmr.msra.gmra.mrb[4].mxu1 %v3390_v18  ;;  %v3004_v18 = vld [vmem:[#allocation5 + $0x468] ss:$16 sps:$4 sm:$0xff]  }
 0x10d   :  { %1559 = vmatpush1.bf16.msra.mxu1 %v2995_v28  ;;  %1590 = vmatprep.mubr.bf16.mxu1 %v3402_v51  ;;  %v3085_v51 = vld [vmem:[#allocation7 + $0xd0] ss:$8 sps:$4 sm:$0xff]  }
 0x10e   :  { %1560 = vmatprep.subr.bf16.mxu1 %v3000_v29  ;;  %2113 = vmatpush1.bf16.msra.mxu0 %v3079_v34  ;;  %v1676_v29 = vrot.slane %v1671_v21, %v3433_v20  ;;  %v3138_v21 = vld [vmem:[#allocation7 + $0x1e4] ss:$8 sps:$4 sm:$0xff]  }
 0x10f   :  { %2114 = vmatprep.subr.bf16.mxu0 %v3084_v36 }
 0x111   :  { %1561 = vmatpush1.bf16.msra.mxu1 %v2998_v32 }
 0x112   :  { %1562 = vmatprep.subr.bf16.mxu1 %v3003_v33  ;;  %2115 = vmatpush1.bf16.msra.mxu0 %v3082_v39  ;;  %v3145_v33 = vld [vmem:[#allocation8 + $0x8] sm:$0xff]  }
 0x113   :  { %2116 = vmatprep.subr.bf16.mxu0 %v3087_v40 }
 0x115   :  { %1563 = vmatpush1.bf16.msra.mxu1 %v3001_v37  ;;  %v3146_v37 = vld [vmem:[#allocation8 + $0x50] sm:$0xff]  }
 0x116   :  { %1564 = vmatprep.subr.bf16.mxu1 %v3006_v38  ;;  %2117 = vmatpush1.bf16.msra.mxu0 %v3085_v51 }
 0x117   :  { %2118 = vmatprep.subr.bf16.mxu0 %v3090_v52  ;;  %v3102_v52 = vld [vmem:[#allocation7 + $0x124] ss:$8 sps:$4 sm:$0xff]  }
 0x119   :  { %1565 = vmatpush1.bf16.msra.mxu1 %v3004_v18  ;;  %v3147_v18 = vld [vmem:[#allocation8 + $0x10] sm:$0xff]  }
 0x11a   :  { %1566 = vmatprep.subr.bf16.mxu1 %v3009_v41  ;;  %2119 = vmatpush1.bf16.msra.mxu0 %v3088_v54  ;;  %v3148_v41 = vld [vmem:[#allocation8 + $0x58] sm:$0xff]   ;;  %v3152_v54 = vld [vmem:[#allocation8 + $0x68] sm:$0xff]  }
 0x11b   :  { %2120 = vmatprep.subr.bf16.mxu0 %v3093_v56  ;;  %v3105_v56 = vld [vmem:[#allocation7 + $0x134] ss:$8 sps:$4 sm:$0xff]  }
 0x11d   :  { %1567 = vmatpush1.bf16.msra.mxu1 %v3007_v16  ;;  %v3094_v16 = vld [vmem:[#allocation7 + $0x100] ss:$8 sps:$4 sm:$0xff]  }
 0x11e   :  { %1568 = vmatprep.subr.bf16.mxu1 %v3012_v42  ;;  %2121 = vmatpush1.bf16.msra.mxu0 %v3091_v58  ;;  %v3103_v58 = vld [vmem:[#allocation7 + $0x130] ss:$8 sps:$4 sm:$0xff]  }
 0x11f   :  { %2131 = vmatprep.subr.bf16.mxu0 %v3096_v62  ;;  %v3109_v62 = vld [vmem:[#allocation7 + $0x150] ss:$8 sps:$4 sm:$0xff]  }
 0x121   :  { %1569 = vmatpush1.bf16.msra.mxu1 %v3010_v44 }
 0x122   :  { %1570 = vmatprep.subr.bf16.mxu1 %v3015_v3  ;;  %v3099_v3 = vld [vmem:[#allocation7 + $0x114] ss:$8 sps:$4 sm:$0xff]  }
 0x125   :  { %1571 = vmatpush1.bf16.msra.mxu1 %v3013_v49 }
 0x126   :  { %1572 = vmatprep.subr.bf16.mxu1 %v3018_v45 }
 0x129   :  { %1573 = vmatpush1.bf16.msra.mxu1 %v3016_v46  ;;  %v3149_v46 = vld [vmem:[#allocation8 + $0x18] sm:$0xff]  }
 0x12a   :  { %1574 = vmatprep.subr.bf16.mxu1 %v3021_v47 }
 0x12d   :  { %1575 = vmatpush1.bf16.msra.mxu1 %v3019_v48  ;;  %v3150_v48 = vld [vmem:[#allocation8 + $0x60] sm:$0xff]  }
 0x12e   :  { %1576 = vmatprep.subr.bf16.mxu1 %v3024_v50  ;;  %v3097_v50 = vld [vmem:[#allocation7 + $0x110] ss:$8 sps:$4 sm:$0xff]  }
 0x131   :  { %1577 = vmatpush1.bf16.msra.mxu1 %v3022_v53  ;;  %v3151_v53 = vld [vmem:[#allocation8 + $0x20] sm:$0xff]  }
 0x132   :  { %1578 = vmatprep.subr.bf16.mxu1 %v3027_v55  ;;  %v3100_v55 = vld [vmem:[#allocation7 + $0x120] ss:$8 sps:$4 sm:$0xff]  }
 0x135   :  { %1579 = vmatpush1.bf16.msra.mxu1 %v3025_v57  ;;  %v3153_v57 = vld [vmem:[#allocation8 + $0x28] sm:$0xff]  }
 0x136   :  { %1580 = vmatprep.subr.bf16.mxu1 %v3030_v59  ;;  %v3108_v59 = vld [vmem:[#allocation7 + $0x144] ss:$8 sps:$4 sm:$0xff]  }
 0x139   :  { %1581 = vmatpush1.bf16.msra.mxu1 %v3028_v60  ;;  %v3106_v60 = vld [vmem:[#allocation7 + $0x140] ss:$8 sps:$4 sm:$0xff]  }
 0x13a   :  { %1582 = vmatprep.subr.bf16.mxu1 %v3033_v61  ;;  %v3111_v61 = vld [vmem:[#allocation7 + $0x154] ss:$8 sps:$4 sm:$0xff]  }
 0x13d   :  { %1583 = vmatpush1.bf16.msra.mxu1 %v3031_v63  ;;  %v3114_v63 = vld [vmem:[#allocation7 + $0x164] ss:$8 sps:$4 sm:$0xff]  }
 0x13e   :  { %1584 = vmatprep.subr.bf16.mxu1 %v3036_v0  ;;  %v3112_v0 = vld [vmem:[#allocation7 + $0x160] ss:$8 sps:$4 sm:$0xff]  }
 0x141   :  { %1585 = vmatpush1.bf16.msra.mxu1 %v3034_v1  ;;  %v3117_v1 = vld [vmem:[#allocation7 + $0x174] ss:$8 sps:$4 sm:$0xff]  }
 0x142   :  { %1586 = vmatprep.subr.bf16.mxu1 %v3042_v2  ;;  %v3115_v2 = vld [vmem:[#allocation7 + $0x170] ss:$8 sps:$4 sm:$0xff]  }
 0x145   :  { %1587 = vmatpush1.bf16.msra.mxu1 %v3040_v4  ;;  %v3120_v4 = vld [vmem:[#allocation7 + $0x184] ss:$8 sps:$4 sm:$0xff]  }
 0x146   :  { %1588 = vmatprep.subr.bf16.mxu1 %v3045_v5  ;;  %v3118_v5 = vld [vmem:[#allocation7 + $0x180] ss:$8 sps:$4 sm:$0xff]  }
 0x149   :  { %1589 = vmatpush1.bf16.msra.mxu1 %v3043_v6  ;;  %v3123_v6 = vld [vmem:[#allocation7 + $0x194] ss:$8 sps:$4 sm:$0xff]  }
 0x14a   :  { %2690 = vmatprep.subr.bf16.mxu1 %v3142_v23  ;;  %v3141_v23 = vld [vmem:[#allocation7 + $0x1f4] ss:$8 sps:$4 sm:$0xff]  }
 0x14c   :  { %1591 = vmatmul.mubr.bf16.vlgmr.msra.gmra.mrb[4].mxu1 %v3407_v27  ;;  %v3430_v27 = vrot.slane %v1653_v17, %v3424_v15  ;;  %v3133_v17 = vld [vmem:[#allocation7 + $0x1d0] ss:$8 sps:$4 sm:$0xff]  }
 0x14d   :  { %2691 = vmatpush3.bf16.msra.mxu1 %v3143_v24  ;;  %v3139_v24 = vld [vmem:[#allocation7 + $0x1f0] ss:$8 sps:$4 sm:$0xff]  }
 0x14e   :  { %v1678_v22 = vpack.i.b16 %v3430_v27, %v3430_v27  ;;  %2692 = vmatprep.subr.bf16.mxu1 %v3144_v25  ;;  %v1668_v25 = vcombine.high %v3427_v19, %v3427_v19 }
 0x150   :  { %v1683_v32 = vrot.slane %v1678_v22, %v3433_v20  ;;  %v3136_v22 = vld [vmem:[#allocation7 + $0x1e0] ss:$8 sps:$4 sm:$0xff]  }
 0x151   :  { %2693 = vmatpush3.bf16.msra.mxu1 %v3145_v33 }
 0x152   :  { %2694 = vmatprep.subr.bf16.mxu1 %v3146_v37 }
 0x155   :  { %2695 = vmatpush3.bf16.msra.mxu1 %v3147_v18 }
 0x156   :  { %2696 = vmatprep.subr.bf16.mxu1 %v3148_v41  ;;  %v3154_v41 = vld [vmem:[#allocation8 + $0x70] sm:$0xff]  }
 0x159   :  { %2697 = vmatpush3.bf16.msra.mxu1 %v3149_v46 }
 0x15a   :  { %2698 = vmatprep.subr.bf16.mxu1 %v3150_v48 }
 0x15d   :  { %2699 = vmatpush3.bf16.msra.mxu1 %v3151_v53 }
 0x15e   :  { %2700 = vmatprep.subr.bf16.mxu1 %v3152_v54 }
 0x15f   :  { %v1346_v7 = vpop.f32.mrb[0].mxu1 }
 0x160   :  { %v1348_v8 = vpop.f32.mrb[1].mxu1 }
 0x161   :  { %v1350_v9 = vpop.f32.mrb[2].mxu1  ;;  %2701 = vmatpush3.bf16.msra.mxu1 %v3153_v57 }
 0x162   :  { %v1351_v10 = vpop.f32.mrb[3].mxu1  ;;  %v3124_v9 = vld [vmem:[#allocation7 + $0x1a0] ss:$8 sps:$4 sm:$0xff]   ;;  %2702 = vmatprep.subr.bf16.mxu1 %v3154_v41 }
 0x163   :  { %v3129_v10 = vld [vmem:[#allocation7 + $0x1b4] ss:$8 sps:$4 sm:$0xff]  }
 0x1ac   :  { %v1469_v26 = vpop.f32.mrb[0].mxu0 }
 0x1ad   :  { %v2712_v28 = vadd.f32 %v1469_v26, %v1346_v7  ;;  %v1471_v30 = vpop.f32.mrb[1].mxu0  ;;  %v3121_v7 = vld [vmem:[#allocation7 + $0x190] ss:$8 sps:$4 sm:$0xff]   ;;  %v1669_v26 = vcombine.high %v3430_v27, %v3430_v27 }
 0x1ae   :  { %v2713_v31 = vadd.f32 %v1471_v30, %v1348_v8  ;;  %v1473_v43 = vpop.f32.mrb[2].mxu0  ;;  %v3126_v8 = vld [vmem:[#allocation7 + $0x1a4] ss:$8 sps:$4 sm:$0xff]  }
 0x1af   :  { %v1640_v34 = vpack.c.bf16 %v2712_v28, %v2712_v28  ;;  %v1474_v36 = vpop.f32.mrb[3].mxu0  ;;  %v1685_v28 = vpack.i.b16 %v1668_v25, %v1668_v25 }
 0x1b0   :  { %v1641_v38 = vpack.c.bf16 %v2713_v31, %v2713_v31 }
 0x1b1   :  { %v1698_v39 = vadd.bf16 %v1676_v29, %v1640_v34  ;;  %v1692_v29 = vpack.i.b16 %v1669_v26, %v1669_v26 }
 0x1b2   :  { %v1699_v40 = vadd.bf16 %v1683_v32, %v1641_v38  ;;  %v1690_v32 = vrot.slane %v1685_v28, %v3433_v20 }
 0x1b3   :  { %v1702_v44 = vmax.bf16 %v3287_v35, %v1698_v39  ;;  %v1697_v34 = vrot.slane %v1692_v29, %v3433_v20 }
 0x1b4   :  { %v1703_v51 = vmax.bf16 %v3287_v35, %v1699_v40  ;;  %v3442_v42 = vpop.f32.mrb[4].mxu0 }
 0x1b5   :  { %v3445_v49 = vpop.f32.mrb[5].mxu0 }
 0x1b6   :  { %2122 = vmatprep.mubr.bf16.mxu0 %v1703_v51  ;;  %v1637_v45 = vpop.f32.mrb[6].mxu0  ;;  %v3155_v51 = vld [vmem:[#allocation8 + $0x30] sm:$0xff]  }
 0x1b7   :  { %2123 = vmatmul.mubr.bf16.vlgmr.msra.gmra.mrb[8].mxu0 %v1702_v44  ;;  %v1638_v47 = vpop.f32.mrb[7].mxu0  ;;  %2703 = vmatpush3.bf16.msra.mxu1 %v3155_v51  ;;  %v2672_v44 = vld.sshfl [vmem:[%s3485_s4] sm:$0x11 pattern:$0x75316420] }
 0x1b8   :  { %2132 = vmatpush1.bf16.msra.mxu0 %v3094_v16  ;;  %v3156_v16 = vld [vmem:[#allocation8 + $0x78] sm:$0xff]  }
 0x1b9   :  { %2133 = vmatprep.subr.bf16.mxu0 %v3099_v3  ;;  %2704 = vmatprep.subr.bf16.mxu1 %v3156_v16  ;;  %v2183_v3 = vcombine.high %v2672_v44, %v2672_v44 }
 0x1bb   :  { %v2197_v45 = vrot.slane %v2183_v3, %v3424_v15 }
 0x1bc   :  { %2134 = vmatpush1.bf16.msra.mxu0 %v3097_v50 }
 0x1bd   :  { %2135 = vmatprep.subr.bf16.mxu0 %v3102_v52  ;;  %v2206_v47 = vpack.i.b16 %v2197_v45, %v2197_v45 }
 0x1bf   :  { %v2211_v52 = vrot.slane %v2206_v47, %v3433_v20 }
 0x1c0   :  { %2136 = vmatpush1.bf16.msra.mxu0 %v3100_v55 }
 0x1c1   :  { %2137 = vmatprep.subr.bf16.mxu0 %v3105_v56 }
 0x1c4   :  { %2138 = vmatpush1.bf16.msra.mxu0 %v3103_v58 }
 0x1c5   :  { %2139 = vmatprep.subr.bf16.mxu0 %v3108_v59 }
 0x1c8   :  { %2140 = vmatpush1.bf16.msra.mxu0 %v3106_v60 }
 0x1c9   :  { %2141 = vmatprep.subr.bf16.mxu0 %v3111_v61 }
 0x1cc   :  { %2142 = vmatpush1.bf16.msra.mxu0 %v3109_v62  ;;  %v2673_v62 = vld [vmem:[%s3487_s6] ss:$0 sm:$0xff] }
 0x1cd   :  { %2143 = vmatprep.subr.bf16.mxu0 %v3114_v63 }
 0x1d0   :  { %2144 = vmatpush1.bf16.msra.mxu0 %v3112_v0 }
 0x1d1   :  { %2145 = vmatprep.subr.bf16.mxu0 %v3117_v1 }
 0x1d4   :  { %2146 = vmatpush1.bf16.msra.mxu0 %v3115_v2 }
 0x1d5   :  { %2147 = vmatprep.subr.bf16.mxu0 %v3120_v4 }
 0x1d8   :  { %2148 = vmatpush1.bf16.msra.mxu0 %v3118_v5 }
 0x1d9   :  { %2149 = vmatprep.subr.bf16.mxu0 %v3123_v6 }
 0x1dc   :  { %2150 = vmatpush1.bf16.msra.mxu0 %v3121_v7 }
 0x1dd   :  { %2151 = vmatprep.subr.bf16.mxu0 %v3126_v8 }
 0x1e0   :  { %2152 = vmatpush1.bf16.msra.mxu0 %v3124_v9 }
 0x1e1   :  { %2153 = vmatprep.subr.bf16.mxu0 %v3129_v10 }
 0x1e4   :  { %2154 = vmatpush1.bf16.msra.mxu0 %v3127_v11 }
 0x1e5   :  { %2155 = vmatprep.subr.bf16.mxu0 %v3132_v12 }
 0x1e8   :  { %2156 = vmatpush1.bf16.msra.mxu0 %v3130_v13 }
 0x1e9   :  { %2157 = vmatprep.subr.bf16.mxu0 %v3135_v14 }
 0x1ec   :  { %2158 = vmatpush1.bf16.msra.mxu0 %v3133_v17 }
 0x1ed   :  { %2159 = vmatprep.subr.bf16.mxu0 %v3138_v21 }
 0x1f0   :  { %2160 = vmatpush1.bf16.msra.mxu0 %v3136_v22 }
 0x1f1   :  { %2161 = vmatprep.subr.bf16.mxu0 %v3141_v23 }
 0x1f4   :  { %2162 = vmatpush1.bf16.msra.mxu0 %v3139_v24 }
 0x21f   :  { %v1592_v30 = vpop.f32.mrb[4].mxu1 }
 0x220   :  { %v2714_v31 = vadd.f32 %v3442_v42, %v1592_v30  ;;  %v1594_v43 = vpop.f32.mrb[5].mxu1  ;;  %v3157_v42 = vld [vmem:[#allocation8 + $0x38] sm:$0xff]  }
 0x221   :  { %v2715_v33 = vadd.f32 %v3445_v49, %v1594_v43  ;;  %v1596_v36 = vpop.f32.mrb[6].mxu1  ;;  %2705 = vmatpush3.bf16.msra.mxu1 %v3157_v42  ;;  %v2190_v49 = vrot.slane %v2672_v44, %v3424_v15 }
 0x222   :  { %v1642_v37 = vpack.c.bf16 %v2714_v31, %v2714_v31  ;;  %v1597_v38 = vpop.f32.mrb[7].mxu1 }
 0x223   :  { %v1643_v39 = vpack.c.bf16 %v2715_v33, %v2715_v33  ;;  %v2199_v46 = vpack.i.b16 %v2190_v49, %v2190_v49 }
 0x224   :  { %v1700_v19 = vadd.bf16 %v1690_v32, %v1642_v37 }
 0x225   :  { %v1701_v40 = vadd.bf16 %v1697_v34, %v1643_v39  ;;  %v2204_v48 = vrot.slane %v2199_v46, %v3433_v20 }
 0x226   :  { %v1704_v18 = vmax.bf16 %v3287_v35, %v1700_v19 }
 0x227   :  { %v1705_v27 = vmax.bf16 %v3287_v35, %v1701_v40 }
 0x229   :  { %2163 = vmatprep.mubr.bf16.mxu0 %v1705_v27 }
 0x22a   :  { %2164 = vmatmul.mubr.bf16.vlgmr.msra.gmra.mrb[8].mxu0 %v1704_v18 }
 0x2fd   :  { %v2165_v50 = vpop.f32.mrb[8].mxu0 }
 0x2fe   :  { %v2172_v53 = vpack.c.bf16 %v2165_v50, %v2165_v50  ;;  %v2167_v54 = vpop.f32.mrb[9].mxu0 }
 0x2ff   :  { %v2173_v55 = vpack.c.bf16 %v2167_v54, %v2167_v54  ;;  %v2169_v56 = vpop.f32.mrb[10].mxu0 }
 0x300   :  { %v2212_v57 = vadd.bf16 %v2204_v48, %v2172_v53  ;;  %v2170_v58 = vpop.f32.mrb[11].mxu0 }
 0x301   :  { %v2213_v59 = vadd.bf16 %v2211_v52, %v2173_v55 }
 0x302   :  { %v2214_v61 = vmax.bf16 %v3287_v35, %v2212_v57 }
 0x303   :  { %v2215_v60 = vmax.bf16 %v3287_v35, %v2213_v59 }
 0x305   :  { %2383 = vmatprep.mubr.bf16.mxu1 %v2215_v60 }
 0x306   :  { %2384 = vmatmul.mubr.bf16.vlgmr.msra.gmra.mrb[8].mxu1 %v2214_v61 }
 0x3d9   :  { %v2706_v15 = vpop.f32.mrb[8].mxu1 }
 0x3da   :  { %v2707_v63 = vpop.f32.mrb[9].mxu1 }
 0x3db   :  { %v2708_v20 = vadd.f32 %v2707_v63, %v2706_v15  ;;  %v2709_v0 = vpop.f32.mrb[10].mxu1 }
 0x3dc   :  { %v2710_v1 = vpop.f32.mrb[11].mxu1 }
 0x3dd   :  { %v2386_v2 = vadd.f32 %v2708_v20, %v2673_v62 }
 0x3df   :  { %2391 = vst [vmem:[#allocation10] sm:$0x3] %v2386_v2 }
 0x3e0   :  { %3257 = shalt.err (!%p3254_p8)
}
 0x3e1   :  { %s3258_s6 = scalar_lea.hbm %s3488_s7, 32 }
 0x3e2   :  { %p3259_p9 = scmp.ne.s32.totalorder %s3488_s7, %s3258_s6  ;;  %p3262_p10 = scmp.lt.u32.totalorder %s3258_s6, %s3488_s7 }
 0x3e4   :  { %p3264_p11 = pnand %p3262_p10, %p3259_p9 }
 0x3e6   :  { %3267 = shalt.err (!%p3264_p11)
}
 0x3e7   :  { %2401 = dma.vmem_to_hbm [thread:$0]  %s2399_s9, 32, %s3488_s7, [#allocation4]  }
 0x3e8   :  { %3274 = dma.done.wait [#allocation4], 32  }
 0x3e9   :  { %3275 = vsyncadd [#allocation4], 4294967264 }
 0x3ea   :  { %2405 = vsyncpa [#allocation3], 1 }
 0x3eb   :  { %2406 = vsyncpa [#allocation6], 1 }
 0x3ec   :  { %2407 = vsyncpa [#allocation9], 1 }
 0x3ed   :  { %2408 = vsyncpa [#allocation4], 1 }

</bundles_post_ra>
